<compile_context>
chip_gen: v5e
topology: v5e:2x2
jax: 0.10.0
libtpu: 0.0.40
codegen_flags: <defaults>
</compile_context>

<pallas_src>
import functools

import jax
import jax.numpy as jnp
from jax.experimental import pallas as pl
from jax.experimental.pallas import tpu as pltpu


def _seg_loss_kernel(pred_ref, tgt_ref, out_ref, *,
                     rb, acc_rows, use_dice_loss, need_mask, approx_reciprocal):
    r = pl.program_id(1)

    # Output block is resident across the (arbitrary) r axis -> accumulator.
    @pl.when(r == 0)
    def _():
        out_ref[...] = jnp.zeros_like(out_ref)

    # Channel split + cast happen here, per tile (no wrapper-side copies).
    l0 = pred_ref[0, 0].astype(jnp.float32)           # (tile_r, 128)
    l1 = pred_ref[0, 1].astype(jnp.float32)           # (tile_r, 128)
    t = (tgt_ref[0] != 0).astype(jnp.float32)         # (tile_r, 128)
    tile_r = l0.shape[0]

    # 2-class CE / sigmoid reformulated around d = l1 - l0:
    #   CE(pixel) = softplus((1-2t)*d) = max(z,0) + log1p(exp(-|z|)),  |z|=|d|
    #   p1(pixel) = sigmoid(d)         (reuses e = exp(-|d|))
    d = l1 - l0
    e = jnp.exp(-jnp.abs(d))            # single exp per pixel (EUP)
    log_term = jnp.log1p(e)             # single log per pixel (EUP)
    z = (1.0 - 2.0 * t) * d
    ce_pix = jnp.maximum(z, 0.0) + log_term

    if use_dice_loss:
        num = jnp.where(d >= 0.0, 1.0, e)
        if approx_reciprocal:
            p1 = num * pl.reciprocal(1.0 + e, approx=True)
        else:
            p1 = num / (1.0 + e)

    if need_mask:
        # Ragged tail: rows past rb are unspecified padding -> mask them out.
        row_idx = jax.lax.broadcasted_iota(jnp.int32, (tile_r, 128), 0)
        valid = row_idx < (rb - r * tile_r)
        ce_pix = jnp.where(valid, ce_pix, 0.0)
        if use_dice_loss:
            p1 = jnp.where(valid, p1, 0.0)
            t = jnp.where(valid, t, 0.0)

    def partial_sum(x):
        # (tile_r,128) -> (acc_rows,128): leading-dim reduce == pure vreg adds
        # on the VPU; cross-lane (XLU) work is deferred to the wrapper.
        return x.reshape(-1, acc_rows, 128).sum(axis=0)

    out_ref[0, 0] += partial_sum(ce_pix)
    if use_dice_loss:
        out_ref[0, 1] += partial_sum(p1 * t)        # intersection
        out_ref[0, 2] += partial_sum(p1 + t)        # merged denominator sums


_VMEM_INPUT_BUDGET = 12 << 20   # double-buffered input bytes per step (all gens)


def _tile_rows(rb, pred_dtype, tgt_dtype, max_tile_rows):
    """Row-tile size: as large as VMEM allows, stepped by 32 (covers f32 (8,128),
    bf16 (16,128), int8/uint8 (32,128) packing), or the full extent if small."""
    bytes_per_row = 128 * (2 * jnp.dtype(pred_dtype).itemsize
                           + jnp.dtype(tgt_dtype).itemsize)
    cap = _VMEM_INPUT_BUDGET // (2 * bytes_per_row)          # double-buffered
    target = max(32, (min(max_tile_rows, cap) // 32) * 32)
    return rb if rb <= target else target


def segmentation_loss(predictions, targets, use_dice_loss=True, smooth=1.0,
                      max_tile_rows=4096, approx_reciprocal=True):
    """predictions: (B, 2, H, W) float logits (f32 or bf16);
       targets: (B, 1, H, W) integer/bool mask with values {0,1}."""
    B, C, H, W = predictions.shape
    assert C == 2, "binary segmentation expects 2 class channels"
    hw = H * W
    assert hw % 128 == 0, "H*W must be a multiple of 128 for lane tiling"
    rb = hw // 128
    n_pixels = B * hw

    tile_r = _tile_rows(rb, predictions.dtype, targets.dtype, max_tile_rows)
    num_tiles = pl.cdiv(rb, tile_r)
    need_mask = (num_tiles * tile_r != rb)
    acc_rows = 8 if tile_r % 8 == 0 else tile_r

    # Contiguous views only -- no extra HBM copies, no dtype casts here.
    preds = predictions.reshape(B, 2, rb, 128)
    tgts = targets.reshape(B, rb, 128)

    kernel = functools.partial(
        _seg_loss_kernel,
        rb=rb,
        acc_rows=acc_rows,
        use_dice_loss=use_dice_loss,
        need_mask=need_mask,
        approx_reciprocal=approx_reciprocal,
    )

    bytes_in = (preds.size * preds.dtype.itemsize
                + tgts.size * tgts.dtype.itemsize)
    out_bytes = B * 3 * acc_rows * 128 * 4
    cost = pl.CostEstimate(
        flops=20 * n_pixels,
        transcendentals=(3 if use_dice_loss else 2) * n_pixels,
        bytes_accessed=bytes_in + out_bytes,
    )

    partials = pl.pallas_call(
        kernel,
        out_shape=jax.ShapeDtypeStruct((B, 3, acc_rows, 128), jnp.float32),
        grid_spec=pltpu.PrefetchScalarGridSpec(
            num_scalar_prefetch=0,
            grid=(B, num_tiles),
            in_specs=[
                pl.BlockSpec((1, 2, tile_r, 128), lambda b, r: (b, 0, r, 0)),
                pl.BlockSpec((1, tile_r, 128), lambda b, r: (b, r, 0)),
            ],
            out_specs=pl.BlockSpec((1, 3, acc_rows, 128),
                                   lambda b, r: (b, 0, 0, 0)),
        ),
        compiler_params=pltpu.CompilerParams(
            dimension_semantics=("parallel", "arbitrary"),
            vmem_limit_bytes=32 << 20,
        ),
        cost_estimate=cost,
    )(preds, tgts)

    # Tiny wrapper-side reduce of per-batch partials (works for 1 or 2 TCs).
    sums = jnp.sum(partials, axis=(0, 2, 3))          # (3,)
    ce = sums[0] / jnp.float32(n_pixels)
    if use_dice_loss:
        dice = 1.0 - (2.0 * sums[1] + smooth) / (sums[2] + smooth)
        return 0.5 * ce + 0.5 * dice
    return ce


def _reference_loss(predictions, targets, use_dice_loss=True, smooth=1.0):
    """Plain-JAX reference mirroring the PyTorch module."""
    preds = predictions.astype(jnp.float32)
    tgt = targets[:, 0, :, :].astype(jnp.int32)       # (B, H, W)
    logits = jnp.moveaxis(preds, 1, -1)               # (B, H, W, 2)
    lse = jax.nn.logsumexp(logits, axis=-1)
    sel = jnp.take_along_axis(logits, tgt[..., None], axis=-1)[..., 0]
    ce = jnp.mean(lse - sel)
    if not use_dice_loss:
        return ce
    p1 = jax.nn.softmax(preds, axis=1)[:, 1, :, :].reshape(-1)
    tf = tgt.astype(jnp.float32).reshape(-1)
    inter = jnp.sum(p1 * tf)
    dice = 1.0 - (2.0 * inter + smooth) / (jnp.sum(p1) + jnp.sum(tf) + smooth)
    return 0.5 * ce + 0.5 * dice


if __name__ == "__main__":
    key = jax.random.PRNGKey(0)
    k_pred, k_tgt, k_pred2, k_tgt2 = jax.random.split(key, 4)

    B, H, W = 2, 16, 16
    predictions = jax.random.normal(k_pred, (B, 2, H, W), dtype=jnp.float32)
    targets = jax.random.bernoulli(k_tgt, 0.4, (B, 1, H, W)).astype(jnp.int32)

    # CE + Dice (default: approx reciprocal on the sigmoid denominator).
    loss = jax.block_until_ready(segmentation_loss(predictions, targets, True))
    ref = _reference_loss(predictions, targets, True)
    assert jnp.allclose(loss, ref, atol=5e-3, rtol=5e-3), (loss, ref)

    # CE + Dice, exact reciprocal (tight check of the math path).
    loss_x = jax.block_until_ready(
        segmentation_loss(predictions, targets, True, approx_reciprocal=False))
    assert jnp.allclose(loss_x, ref, atol=1e-5, rtol=1e-5), (loss_x, ref)

    # CE only.
    loss_ce = jax.block_until_ready(segmentation_loss(predictions, targets, False))
    ref_ce = _reference_loss(predictions, targets, False)
    assert jnp.allclose(loss_ce, ref_ce, atol=1e-5, rtol=1e-5), (loss_ce, ref_ce)

    # Narrow dtypes: bf16 logits + int8 mask (5 B/pixel HBM traffic).
    preds_bf16 = predictions.astype(jnp.bfloat16)
    tgts_i8 = targets.astype(jnp.int8)
    loss_n = jax.block_until_ready(segmentation_loss(preds_bf16, tgts_i8, True))
    ref_n = _reference_loss(preds_bf16, tgts_i8, True)
    assert jnp.allclose(loss_n, ref_n, atol=5e-3, rtol=5e-3), (loss_n, ref_n)

    # Ragged-tail path: rb = 48 rows with a forced 32-row tile (mask exercised).
    B2, H2, W2 = 1, 64, 96
    predictions2 = jax.random.normal(k_pred2, (B2, 2, H2, W2), dtype=jnp.float32)
    targets2 = jax.random.bernoulli(k_tgt2, 0.3, (B2, 1, H2, W2)).astype(jnp.int32)
    loss_r = jax.block_until_ready(
        segmentation_loss(predictions2, targets2, True,
                          max_tile_rows=32, approx_reciprocal=False))
    ref_r = _reference_loss(predictions2, targets2, True)
    assert jnp.allclose(loss_r, ref_r, atol=1e-5, rtol=1e-5), (loss_r, ref_r)

    print("KERNEL_OK")
</pallas_src>

<mosaic_0001>
module attributes {stable_mosaic.version = 11 : i64} {
  func.func @_seg_loss_kernel(%arg0: i32, %arg1: i32, %arg2: memref<1x2x2x128xf32, #tpu.memory_space<vmem>>, %arg3: memref<1x2x128xi32, #tpu.memory_space<vmem>>, %arg4: memref<1x3x2x128xf32, #tpu.memory_space<vmem>>) attributes {dimension_semantics = [#tpu.dimension_semantics<parallel>, #tpu.dimension_semantics<arbitrary>], iteration_bounds = array<i64: 2, 1>, scalar_prefetch = 0 : i64, scratch_operands = 0 : i64, tpu.core_type = #tpu.core_type<tc>, window_params = [{transform_indices = @transform_0, window_bounds = array<i64: 1, 2, 2, 128>}, {transform_indices = @transform_1, window_bounds = array<i64: 1, 2, 128>}, {transform_indices = @transform_2, window_bounds = array<i64: 1, 3, 2, 128>}]} {
    %c0_i32 = arith.constant 0 : i32
    %0 = arith.cmpi eq, %arg1, %c0_i32 : i32
    %1 = arith.extui %0 : i1 to i32
    %c0_i32_0 = arith.constant 0 : i32
    %2 = arith.cmpi ne, %1, %c0_i32_0 : i32
    scf.if %2 {
      %cst_43 = arith.constant 0.000000e+00 : f32
      %61 = vector.broadcast %cst_43 : f32 to vector<1x3x2x128xf32>
      %c0_44 = arith.constant 0 : index
      %c0_45 = arith.constant 0 : index
      %c0_46 = arith.constant 0 : index
      %c0_47 = arith.constant 0 : index
      %62 = vector.load %arg4[%c0_44, %c0_45, %c0_46, %c0_47] : memref<1x3x2x128xf32, #tpu.memory_space<vmem>>, vector<1x3x2x128xf32>
      tpu.vector_store %arg4[%c0_44, %c0_45, %c0_46, %c0_47], %61 {strides = array<i32>} : memref<1x3x2x128xf32, #tpu.memory_space<vmem>>, vector<1x3x2x128xf32>,
    } else {
    }
    %c0 = arith.constant 0 : index
    %c0_1 = arith.constant 0 : index
    %c0_2 = arith.constant 0 : index
    %c0_3 = arith.constant 0 : index
    %3 = vector.load %arg2[%c0, %c0_1, %c0_2, %c0_3] : memref<1x2x2x128xf32, #tpu.memory_space<vmem>>, vector<1x1x2x128xf32>
    %4 = vector.shape_cast %3 : vector<1x1x2x128xf32> to vector<2x128xf32>
    %c0_4 = arith.constant 0 : index
    %c1 = arith.constant 1 : index
    %c0_5 = arith.constant 0 : index
    %c0_6 = arith.constant 0 : index
    %5 = vector.load %arg2[%c0_4, %c1, %c0_5, %c0_6] : memref<1x2x2x128xf32, #tpu.memory_space<vmem>>, vector<1x1x2x128xf32>
    %6 = vector.shape_cast %5 : vector<1x1x2x128xf32> to vector<2x128xf32>
    %c0_7 = arith.constant 0 : index
    %c0_8 = arith.constant 0 : index
    %c0_9 = arith.constant 0 : index
    %7 = vector.load %arg3[%c0_7, %c0_8, %c0_9] : memref<1x2x128xi32, #tpu.memory_space<vmem>>, vector<1x2x128xi32>
    %8 = vector.shape_cast %7 : vector<1x2x128xi32> to vector<2x128xi32>
    %c0_i32_10 = arith.constant 0 : i32
    %9 = vector.broadcast %c0_i32_10 : i32 to vector<2x128xi32>
    %10 = arith.cmpi ne, %8, %9 : vector<2x128xi32>
    %11 = arith.extui %10 : vector<2x128xi1> to vector<2x128xi32>
    %12 = arith.sitofp %11 : vector<2x128xi32> to vector<2x128xf32>
    %13 = arith.subf %6, %4 : vector<2x128xf32>
    %14 = math.absf %13 : vector<2x128xf32>
    %cst = arith.constant 0.000000e+00 : f32
    %15 = vector.broadcast %cst : f32 to vector<2x128xf32>
    %16 = arith.subf %15, %14 : vector<2x128xf32>
    %17 = math.exp %16 : vector<2x128xf32>
    %18 = math.log1p %17 : vector<2x128xf32>
    %cst_11 = arith.constant 2.000000e+00 : f32
    %19 = vector.broadcast %cst_11 : f32 to vector<2x128xf32>
    %20 = arith.mulf %19, %12 : vector<2x128xf32>
    %cst_12 = arith.constant 1.000000e+00 : f32
    %21 = vector.broadcast %cst_12 : f32 to vector<2x128xf32>
    %22 = arith.subf %21, %20 : vector<2x128xf32>
    %23 = arith.mulf %22, %13 : vector<2x128xf32>
    %cst_13 = arith.constant 0.000000e+00 : f32
    %24 = vector.broadcast %cst_13 : f32 to vector<2x128xf32>
    %25 = arith.maximumf %23, %24 : vector<2x128xf32>
    %26 = arith.addf %25, %18 : vector<2x128xf32>
    %cst_14 = arith.constant 0.000000e+00 : f32
    %27 = vector.broadcast %cst_14 : f32 to vector<2x128xf32>
    %28 = arith.cmpf oge, %13, %27 : vector<2x128xf32>
    %cst_15 = arith.constant 1.000000e+00 : f32
    %29 = vector.broadcast %cst_15 : f32 to vector<2x128xf32>
    %30 = arith.select %28, %29, %17 : vector<2x128xi1>, vector<2x128xf32>
    %cst_16 = arith.constant 1.000000e+00 : f32
    %31 = vector.broadcast %cst_16 : f32 to vector<2x128xf32>
    %32 = arith.addf %31, %17 : vector<2x128xf32>
    %33 = tpu.reciprocal %32 {approx = true} : vector<2x128xf32> -> vector<2x128xf32>
    %34 = arith.mulf %30, %33 : vector<2x128xf32>
    %c0_17 = arith.constant 0 : index
    %c0_18 = arith.constant 0 : index
    %c0_19 = arith.constant 0 : index
    %c0_20 = arith.constant 0 : index
    %35 = vector.load %arg4[%c0_17, %c0_18, %c0_19, %c0_20] : memref<1x3x2x128xf32, #tpu.memory_space<vmem>>, vector<1x1x2x128xf32>
    %36 = vector.shape_cast %35 : vector<1x1x2x128xf32> to vector<2x128xf32>
    %37 = vector.shape_cast %26 : vector<2x128xf32> to vector<1x2x128xf32>
    %cst_21 = arith.constant dense<0.000000e+00> : vector<2x128xf32>
    %38 = vector.multi_reduction <add>, %37, %cst_21 [0] : vector<1x2x128xf32> to vector<2x128xf32>
    %39 = arith.addf %36, %38 : vector<2x128xf32>
    %c0_22 = arith.constant 0 : index
    %c0_23 = arith.constant 0 : index
    %c0_24 = arith.constant 0 : index
    %c0_25 = arith.constant 0 : index
    %40 = vector.load %arg4[%c0_22, %c0_23, %c0_24, %c0_25] : memref<1x3x2x128xf32, #tpu.memory_space<vmem>>, vector<1x1x2x128xf32>
    %41 = vector.shape_cast %40 : vector<1x1x2x128xf32> to vector<2x128xf32>
    %42 = vector.shape_cast %39 : vector<2x128xf32> to vector<1x1x2x128xf32>
    tpu.vector_store %arg4[%c0_22, %c0_23, %c0_24, %c0_25], %42 {strides = array<i32>} : memref<1x3x2x128xf32, #tpu.memory_space<vmem>>, vector<1x1x2x128xf32>,
    %c0_26 = arith.constant 0 : index
    %c1_27 = arith.constant 1 : index
    %c0_28 = arith.constant 0 : index
    %c0_29 = arith.constant 0 : index
    %43 = vector.load %arg4[%c0_26, %c1_27, %c0_28, %c0_29] : memref<1x3x2x128xf32, #tpu.memory_space<vmem>>, vector<1x1x2x128xf32>
    %44 = vector.shape_cast %43 : vector<1x1x2x128xf32> to vector<2x128xf32>
    %45 = arith.mulf %34, %12 : vector<2x128xf32>
    %46 = vector.shape_cast %45 : vector<2x128xf32> to vector<1x2x128xf32>
    %cst_30 = arith.constant dense<0.000000e+00> : vector<2x128xf32>
    %47 = vector.multi_reduction <add>, %46, %cst_30 [0] : vector<1x2x128xf32> to vector<2x128xf32>
    %48 = arith.addf %44, %47 : vector<2x128xf32>
    %c0_31 = arith.constant 0 : index
    %c1_32 = arith.constant 1 : index
    %c0_33 = arith.constant 0 : index
    %c0_34 = arith.constant 0 : index
    %49 = vector.load %arg4[%c0_31, %c1_32, %c0_33, %c0_34] : memref<1x3x2x128xf32, #tpu.memory_space<vmem>>, vector<1x1x2x128xf32>
    %50 = vector.shape_cast %49 : vector<1x1x2x128xf32> to vector<2x128xf32>
    %51 = vector.shape_cast %48 : vector<2x128xf32> to vector<1x1x2x128xf32>
    tpu.vector_store %arg4[%c0_31, %c1_32, %c0_33, %c0_34], %51 {strides = array<i32>} : memref<1x3x2x128xf32, #tpu.memory_space<vmem>>, vector<1x1x2x128xf32>,
    %c0_35 = arith.constant 0 : index
    %c2 = arith.constant 2 : index
    %c0_36 = arith.constant 0 : index
    %c0_37 = arith.constant 0 : index
    %52 = vector.load %arg4[%c0_35, %c2, %c0_36, %c0_37] : memref<1x3x2x128xf32, #tpu.memory_space<vmem>>, vector<1x1x2x128xf32>
    %53 = vector.shape_cast %52 : vector<1x1x2x128xf32> to vector<2x128xf32>
    %54 = arith.addf %34, %12 : vector<2x128xf32>
    %55 = vector.shape_cast %54 : vector<2x128xf32> to vector<1x2x128xf32>
    %cst_38 = arith.constant dense<0.000000e+00> : vector<2x128xf32>
    %56 = vector.multi_reduction <add>, %55, %cst_38 [0] : vector<1x2x128xf32> to vector<2x128xf32>
    %57 = arith.addf %53, %56 : vector<2x128xf32>
    %c0_39 = arith.constant 0 : index
    %c2_40 = arith.constant 2 : index
    %c0_41 = arith.constant 0 : index
    %c0_42 = arith.constant 0 : index
    %58 = vector.load %arg4[%c0_39, %c2_40, %c0_41, %c0_42] : memref<1x3x2x128xf32, #tpu.memory_space<vmem>>, vector<1x1x2x128xf32>
    %59 = vector.shape_cast %58 : vector<1x1x2x128xf32> to vector<2x128xf32>
    %60 = vector.shape_cast %57 : vector<2x128xf32> to vector<1x1x2x128xf32>
    tpu.vector_store %arg4[%c0_39, %c2_40, %c0_41, %c0_42], %60 {strides = array<i32>} : memref<1x3x2x128xf32, #tpu.memory_space<vmem>>, vector<1x1x2x128xf32>,
    return
  }
  func.func @transform_0(%arg0: i32, %arg1: i32) -> (i32, i32, i32, i32) {
    %c0_i32 = arith.constant 0 : i32
    %c0_i32_0 = arith.constant 0 : i32
    %c0_i32_1 = arith.constant 0 : i32
    return %arg0, %c0_i32, %arg1, %c0_i32_0 : i32, i32, i32, i32
  }
  func.func @transform_1(%arg0: i32, %arg1: i32) -> (i32, i32, i32) {
    %c0_i32 = arith.constant 0 : i32
    %c0_i32_0 = arith.constant 0 : i32
    return %arg0, %arg1, %c0_i32 : i32, i32, i32
  }
  func.func @transform_2(%arg0: i32, %arg1: i32) -> (i32, i32, i32, i32) {
    %c0_i32 = arith.constant 0 : i32
    %c0_i32_0 = arith.constant 0 : i32
    %c0_i32_1 = arith.constant 0 : i32
    %c0_i32_2 = arith.constant 0 : i32
    return %arg0, %c0_i32, %c0_i32_0, %c0_i32_1 : i32, i32, i32, i32
  }
}

</mosaic_0001>

<bundles_post_ra>
// kernel: tpu_custom_call.1
= control target key start
LH: loop header
LB: loop body
LE: loop exit
PB: predicated region body
PF: predicated region fallthrough
CT: control target
= control target key end

     0   :  { %7 = vsyncpa [#allocation3], 0  ;;  %s819_s0 = inlined_call_operand.hbm [shape: f32[2,2,2,128], index: 0, kind: input, shape index: {}]   ;;  %s820_s1 = inlined_call_operand.hbm [shape: s32[2,2,128], index: 1, kind: input, shape index: {}]   ;;  %s821_s2 = inlined_call_operand.hbm [shape: f32[2,3,2,128], index: 2, kind: output, shape index: {}]  }
   0x1   :  { %9 = vsyncpa [#allocation3 + $0x1], 0 }
   0x2   :  { %10 = vsyncpa [#allocation6], 0 }
   0x3   :  { %12 = vsyncpa [#allocation6 + $0x1], 0 }
   0x4   :  { %13 = vsyncpa [#allocation4], 0 }
   0x5   :  { %15 = vsyncpa [#allocation4 + $0x1], 0  ;;  %s668_s9 = smov 0   ;;  %s670_s10 = smov 0  }
   0x6   :  { %s672_s11 = smov 0   ;;  %s674_s12 = smov 0  }
   0x7   :  { %s676_s13 = smov 0   ;;  %s678_s14 = smov 0  }
   0x8 LB: > { %s398_s15 = sadd.s32 4294967295, %s646_s14   ;;  %s399_s16 = sadd.s32 4294967294, %s646_s14   ;;  %s646_s14 = sphi %s678_s14, %s21_s14   ;;  %s642_s13 = sphi %s676_s13, %s831_s13   ;;  %s638_s12 = sphi %s674_s12, %s830_s12   ;;  %s634_s11 = sphi %s672_s11, %s829_s11   ;;  %s630_s10 = sphi %s670_s10, %s828_s10   ;;  %s626_s9 = sphi %s668_s9, %s827_s9  }
   0x9   : > { %s33_s17 = sadd.s32 1, %s642_s13  ;;  %s42_s18 = sadd.s32 1, %s634_s11 }
   0xa   : > { %p35_p0 = scmp.ge.s32.totalorder %s33_s17, 2  ;;  %p49_p1 = scmp.ne.s32.totalorder %s634_s11, %s630_s10 }
   0xb   : > { %p50_p2 = scmp.eq.s32.totalorder %s646_s14, 0  ;;  %p55_p3 = scmp.ne.s32.totalorder %s630_s10, %s626_s9 }
   0xc   : > { %s833_s17 = smov (%p35_p0, %s33_s17), 0  ;;  %p56_p5 = scmp.eq.s32.totalorder %s398_s15, 0 }
   0xd   : > { %p709_p4 = por %p50_p2, %p49_p1  ;;  %s37_s20 = ssub.s32 %s642_s13, %s833_s17 }
   0xe   : > { %p107_p6 = scmp.eq.s32.totalorder %s398_s15, 1  ;;  %p40_p7 = scmp.eq.s32.totalorder %s37_s20, 0 }
   0xf   : > { %p715_p8 = por %p56_p5, %p55_p3  ;;  %p113_p10 = scmp.eq.s32.totalorder %s399_s16, 1 }
  0x10   : > { %p719_p9 = por %p107_p6, %p49_p1  ;;  %p401_p12 = scmp.ge.s32.totalorder %s646_s14, 2 }
  0x11   : > { %s724_s23 = scalar_select %p40_p7, %s634_s11, %s42_s18  }
  0x12   : > { %p726_p11 = por %p113_p10, %p55_p3  ;;  %p439_p13 = scmp.lt.s32.totalorder %s646_s14, 2 }
  0x13   : > { %s133_s25 = sand.u32 1, %s634_s11   ;;  %s419_s27 = sshll.u32 %s642_s13, 2 }
  0x14   : > { %s402_s26 = sshll.u32 %s133_s25, 2  ;;  %s143_s30 = scalar_lea.hbm %s819_s0, %s419_s27 }
  0x15   : > { %s137_s3 = scalar_lea.vmem [#allocation2], %s402_s26  ;;  %s144_s5 = sshll.u32 %s143_s30, 4  ;;  %s145_s5 = int_to_ptr.hbm [resolvable:$true] %s144_s5 }
  0x16   : > { %s146_s4 = sshll.u32 %s137_s3, 4  ;;  %p739_p0 = pnand %p439_p13, %p709_p4  ;;  %s147_s4 = int_to_ptr.vmem [resolvable:$true] %s146_s4 }
  0x17   : > { %p407_p1 = scmp.ge.s32.totalorder %s646_s14, 1  ;;  %s134_s7 = scalar_lea.sflag [#allocation3], %s133_s25 }
  0x18   : > { %s648_s8 = smov 32   ;;  %s649_s15 = smov 2  }
  0x19   : > { %431 = dma.hbm_to_vmem [thread:$0]  (!%p739_p0), %s145_s5, 64, %s147_s4, %s134_s7, %s648_s8, %s648_s8, %s649_s15  }
  0x1a   : > { %p174_p2 = scmp.lt.s32.totalorder %s646_s14, 3  ;;  %s405_s16 = sshll.u32 %s133_s25, 1 }
  0x1b   : > { %s406_s18 = sshll.u32 %s642_s13, 1  ;;  %s160_s27 = scalar_lea.vmem [#allocation5], %s405_s16 }
  0x1c   : > { %p175_p3 = pnand %p407_p1, %p174_p2  ;;  %s165_s19 = scalar_lea.hbm %s820_s1, %s406_s18 }
  0x1d   : > { %s169_s28 = sshll.u32 %s160_s27, 4  ;;  %s167_s29 = sshll.u32 %s165_s19, 4  ;;  %s170_s28 = int_to_ptr.vmem [resolvable:$true] %s169_s28  ;;  %s168_s29 = int_to_ptr.hbm [resolvable:$true] %s167_s29 }
  0x1e   : > { %s157_s30 = scalar_lea.sflag [#allocation6], %s133_s25  ;;  %178 = sbr.rel (%p175_p3) target bundleno = 78 (0x4e), region = 28 }
  0x1f   : > { %434 = dma.hbm_to_vmem [thread:$0]  (!%p739_p0), %s168_s29, 32, %s170_s28, %s157_s30  }
  0x20   : > { %s754_s3 = sand.u32 (!%p175_p3), 1, %s630_s10  }
  0x21   : > { %s408_s4 = sshll.u32 (!%p175_p3), %s754_s3, 2  ;;  %s181_s5 = scalar_lea.sflag (!%p175_p3), [#allocation3], %s754_s3 }
  0x22   : > { %s184_s7 = scalar_lea.vmem (!%p175_p3), [#allocation2], %s408_s4 }
  0x23   : > { %613 = dma.done.wait (%p715_p8), %s181_s5, 64  }
  0x24   : > { %615 = vsyncadd (%p715_p8), %s181_s5, 4294967232  ;;  %s409_s25 = sshll.u32 %s754_s3, 1  ;;  %s191_s6 = scalar_lea.sflag [#allocation6], %s754_s3 }
  0x25   : > { %s194_s8 = scalar_lea.vmem [#allocation5], %s409_s25 }
  0x26   : > { %617 = dma.done.wait (%p715_p8), %s191_s6, 32  }
  0x27   : > { %619 = vsyncadd (%p715_p8), %s191_s6, 4294967264  ;;  %s420_s15 = smul.u32 6, %s754_s3  ;;  %v650_v0 = vmov 0.0   ;;  %v228_v1 = vld [vmem:[%s184_s7] sm:$0x3]  ;;  %s276_s27 = scalar_lea.sflag [#allocation4], %s754_s3 }
  0x28   : > { %v410_v2 = vld [vmem:[%s184_s7 + $0x2] sm:$0x3]  ;;  %v231_v4 = vld [vmem:[%s194_s8] sm:$0x3]  ;;  %s421_s21 = smul.u32 6, %s638_s12  ;;  %s580_s5 = scalar_lea.hbm %s821_s2, 12 }
  0x29   : > { %s769_s16 = scalar_lea.vmem [#allocation7], %s420_s15  ;;  %v235_v3 = vsub.f32 %v410_v2, %v228_v1  ;;  %vm232_vm0 = vcmp.ne.s32.totalorder %v231_v4, 0 }
  0x2a   : > { %225 = vst [vmem:[%s769_s16] sm:$0x3] %v650_v0  ;;  %v411_v8 = vsel %vm232_vm0, 1.0, %v650_v0  ;;  %s287_s26 = scalar_lea.hbm %s821_s2, %s421_s21  ;;  %s288_s12 = sshll.u32 %s769_s16, 4  ;;  %s289_s12 = int_to_ptr.vmem [resolvable:$true] %s288_s12 }
  0x2b   : > { %226 = vst [vmem:[%s769_s16 + $0x2] sm:$0x3] %v650_v0  ;;  %v236_v5 = vand.u32 2147483647, %v235_v3  ;;  %v249_v9 = vmul.f32 2.0, %v411_v8  ;;  %vm254_vm1 = vcmp.ge.f32.partialorder %v235_v3, 0.0 }
  0x2c   : > { %227 = vst [vmem:[%s769_s16 + $0x4] sm:$0x3] %v650_v0  ;;  %s290_s19 = sshll.u32 %s287_s26, 4  ;;  %s291_s19 = int_to_ptr.hbm [resolvable:$true] %s290_s19 }
  0x2d   : > { %v237_v6 = vsub.f32 0.0, %v236_v5  ;;  %v250_v11 = vsub.f32 1.0, %v249_v9  ;;  %s574_s28 = sshra.s32 %s291_s19, 4  ;;  %s575_s28 = int_to_ptr.hbm [resolvable:$true] %s574_s28 }
  0x2e   : > { %s576_s29 = scalar_lea.hbm %s575_s28, 6  ;;  %p581_p7 = scmp.lt.s32.totalorder %s575_s28, %s821_s2 }
  0x2f   : > { %v238_v7 = vmul.f32 1.442695, %v237_v6  ;;  %v251_v16 = vmul.f32 %v250_v11, %v235_v3  ;;  %p577_p4 = scmp.ne.s32.totalorder %s575_s28, %s576_s29  ;;  %p582_p8 = scmp.lt.s32.totalorder %s580_s5, %s576_s29 }
  0x31   : > { %494 = vpow2.f32 %v238_v7  ;;  %v252_v20 = vmax.f32 %v251_v16, 0.0  ;;  %v259_v25 = vld [vmem:[%s769_s16] sm:$0x3]  ;;  %p578_p5 = pnand %p577_p4, %p719_p9  ;;  %p583_p10 = por %p582_p8, %p581_p7 }
  0x32   : > { %v412_v26 = vld [vmem:[%s769_s16 + $0x2] sm:$0x3] }
  0x33   : > { %v414_v27 = vld [vmem:[%s769_s16 + $0x4] sm:$0x3]  ;;  %p579_p6 = pneg %p578_p5 }
  0x35   : > { %p584_p13 = pnand %p583_p10, %p579_p6 }
  0x37   : > { %v495_v10 = vpop.eup %494 }
  0x38   : > { %v240_v12 = vadd.f32 1.0, %v495_v10  ;;  %v243_v13 = vmul.f32 -0.5, %v495_v10  ;;  %v246_v15 = vand.u32 2147483647, %v495_v10  ;;  %v255_v18 = vsel %vm254_vm1, 1.0, %v495_v10 }
  0x3a   : > { %496 = vlog2.f32 %v240_v12  ;;  %v244_v14 = vadd.f32 1.0, %v243_v13  ;;  %vm247_vm2 = vcmp.lt.f32.partialorder %v246_v15, 0.0004427343 }
  0x3b   : > { %498 = vrcp.f32 %v240_v12 }
  0x3c   : > { %v245_v17 = vmul.f32 %v495_v10, %v244_v14 }
  0x40   : > { %v497_v19 = vpop.eup %496 }
  0x41   : > { %v499_v21 = vpop.eup %498  ;;  %v242_v22 = vmul.f32 0.6931472, %v497_v19 }
  0x42   : > { %v258_v23 = vmul.f32 %v499_v21, %v255_v18 }
  0x43   : > { %v248_v24 = vsel %vm247_vm2, %v245_v17, %v242_v22 }
  0x44   : > { %v253_v28 = vadd.f32 %v252_v20, %v248_v24  ;;  %v265_v29 = vmul.f32 %v411_v8, %v258_v23  ;;  %v271_v30 = vadd.f32 %v411_v8, %v258_v23 }
  0x46   : > { %v261_v31 = vadd.f32 %v259_v25, %v253_v28  ;;  %v267_v32 = vadd.f32 %v412_v26, %v265_v29  ;;  %v273_v33 = vadd.f32 %v414_v27, %v271_v30 }
  0x48   : > { %262 = vst [vmem:[%s769_s16] sm:$0x3] %v261_v31 }
  0x49   : > { %413 = vst [vmem:[%s769_s16 + $0x2] sm:$0x3] %v267_v32 }
  0x4a   : > { %415 = vst [vmem:[%s769_s16 + $0x4] sm:$0x3] %v273_v33 }
  0x4b   : > { %587 = shalt.err (!%p584_p13)
}
  0x4c   : > { %s651_s3 = smov 32   ;;  %s652_s6 = smov 2  }
  0x4d   : > { %426 = dma.vmem_to_hbm [thread:$0]  (%p719_p9), %s289_s12, 96, %s291_s19, %s276_s27, %s651_s3, %s651_s3, %s652_s6  }
  0x4e PF: > { %s305_s8 = sand.u32 1, %s626_s9   ;;  %p436_p0 = pnand %p401_p12, %p726_p11 }
  0x4f   : > { %s306_s15 = scalar_lea.sflag [#allocation4], %s305_s8 }
  0x50   : > { %p437_p1 = pneg %p436_p0 }
  0x52   : > { %621 = dma.done.wait (%p437_p1), %s306_s15, 96  }
  0x53   : > { %623 = vsyncadd (%p437_p1), %s306_s15, 4294967200  ;;  %s21_s14 = sadd.s32 1, %s646_s14   ;;  %s827_s9 = smov %s630_s10 }
  0x54   : > { %p18_p2 = scmp.ge.s32.totalorder %s21_s14, 4   ;;  %s828_s10 = smov %s634_s11 }
  0x55   : > { %s829_s11 = smov %s724_s23  ;;  %s830_s12 = smov %s642_s13 }
  0x56   : > { %s831_s13 = smov %s833_s17  ;;  %20 = sbr.rel (!%p18_p2) target bundleno = 8 (0x8), region = 93 }
  0x5b   :  { %312 = vsyncpa [#allocation3], 1 }
  0x5c   :  { %314 = vsyncpa [#allocation3 + $0x1], 1 }
  0x5d   :  { %315 = vsyncpa [#allocation6], 1 }
  0x5e   :  { %317 = vsyncpa [#allocation6 + $0x1], 1 }
  0x5f   :  { %318 = vsyncpa [#allocation4], 1 }
  0x60   :  { %320 = vsyncpa [#allocation4 + $0x1], 1 }

</bundles_post_ra>
